<compile_context>
chip_gen: v7x
topology: tpu7x:2x2x1
jax: 0.10.0
libtpu: 0.0.40
codegen_flags: <defaults>
</compile_context>

<pallas_src>
import math
import functools

import jax
import jax.numpy as jnp
from jax import lax
from jax.experimental import pallas as pl
from jax.experimental.pallas import tpu as pltpu


def _complex_attn_kernel(head_dim, S, D,
                         x_ref, wqkv_ref, bqkv_ref, wo_ref, bo_ref,
                         out_ref, attn_ref):
    """One (batch, head) grid point.

    x_ref    : (1, 2S, D)   bf16  rows 0..S-1 = real(x), rows S..2S-1 = imag(x)
    wqkv_ref : (1, D, 3*hd) bf16  this head's [wq | wk | wv] columns (wq pre-scaled)
    bqkv_ref : (1, 1, 3*hd) f32
    wo_ref   : (1, hd, D)   bf16  this head's rows of the output projection
    bo_ref   : (1, D)       f32
    out_ref  : (1, 2S, D)   f32   resident accumulator across the head axis
    attn_ref : (1, 1, S, S)       this (batch, head)'s probabilities
    """
    h = pl.program_id(1)
    hd = head_dim

    # First head: initialise the resident output block with the broadcast output
    # bias; every head then accumulates its partial projection into it.
    @pl.when(h == 0)
    def _init():
        out_ref[0] = jnp.broadcast_to(bo_ref[...], (2 * S, D)).astype(jnp.float32)

    x2 = x_ref[0]                                                    # (2S, D) bf16

    # Per-head q/k/v projection: (2S, D) @ (D, 3hd) on the MXU (K = D, fully
    # filled), f32 accumulation + f32 bias.  The softmax scale is folded into
    # wq/bq in the wrapper, so no in-kernel score scaling is needed.
    qkv = jnp.dot(x2, wqkv_ref[0], preferred_element_type=jnp.float32) + bqkv_ref[0]
    qkv16 = qkv.astype(jnp.bfloat16)                                 # (2S, 3hd)

    qr = qkv16[:S, :hd];          qi = qkv16[S:, :hd]
    kr = qkv16[:S, hd:2 * hd];    ki = qkv16[S:, hd:2 * hd]
    vr = qkv16[:S, 2 * hd:];      vi = qkv16[S:, 2 * hd:]

    # scores[i, j] = Re(<q_i, conj(k_j)>) = qr.kr + qi.ki   (scale pre-folded)
    dn = (((1,), (1,)), ((), ()))                                    # q @ k^T
    if hd >= 128:
        # Lane-aligned head slices: two accumulating dots, no concatenation.
        scores = (lax.dot_general(qr, kr, dn, preferred_element_type=jnp.float32)
                  + lax.dot_general(qi, ki, dn, preferred_element_type=jnp.float32))
    else:
        # Small head_dim: concatenate (bf16) to fill the MXU contraction (K=2hd).
        q_cat = jnp.concatenate([qr, qi], axis=1)
        k_cat = jnp.concatenate([kr, ki], axis=1)
        scores = lax.dot_general(q_cat, k_cat, dn,
                                 preferred_element_type=jnp.float32)

    # Softmax over keys, f32.  Exact reciprocal (only S divides) so the returned
    # probability rows sum to 1 -- per the review's correctness note.
    m = jnp.max(scores, axis=-1, keepdims=True)
    e = jnp.exp(scores - m)
    attn = e * (1.0 / jnp.sum(e, axis=-1, keepdims=True))
    attn_ref[0, 0] = attn.astype(attn_ref.dtype)

    # Dropout is identity in eval.  Per-head context, then this head's partial
    # output projection accumulated straight into the resident output block
    # (rows 0..S-1 = real, S..2S-1 = imag; full-width lane-dense stores).
    a16 = attn.astype(jnp.bfloat16)
    ctx_r = jnp.dot(a16, vr, preferred_element_type=jnp.float32).astype(jnp.bfloat16)
    ctx_i = jnp.dot(a16, vi, preferred_element_type=jnp.float32).astype(jnp.bfloat16)

    wo_h = wo_ref[0]                                                 # (hd, D) bf16
    out_ref[0, :S, :] += jnp.dot(ctx_r, wo_h, preferred_element_type=jnp.float32)
    out_ref[0, S:, :] += jnp.dot(ctx_i, wo_h, preferred_element_type=jnp.float32)


def _resolve_vmem_limit(vmem_limit_bytes, S, D, hd, attn_dtype):
    """Compute a scoped-VMEM hint from the actual block sizes ('auto' mode)."""
    if vmem_limit_bytes is None:
        return None
    if vmem_limit_bytes != "auto":
        return int(vmem_limit_bytes)
    attn_b = jnp.dtype(attn_dtype).itemsize
    # Pipeline blocks (double-buffered) + rough bound on in-kernel intermediates.
    blocks = (2 * S * D * 2            # x2 (bf16)
              + D * 3 * hd * 2 + 3 * hd * 4   # per-head qkv weight + bias
              + hd * D * 2 + D * 4            # per-head wo rows + bo
              + 2 * S * D * 4                 # resident f32 output block
              + S * S * attn_b)               # per-head attn block
    interm = (2 * S * 3 * hd * 6       # qkv f32 + bf16
              + 4 * S * S * 4          # scores / exp / attn (f32, with slack)
              + S * S * 2              # attn bf16
              + 2 * S * D * 4)         # accumulator read-modify-write headroom
    est = 2 * blocks + interm + (2 << 20)
    if est <= (32 << 20):              # fits the default scoped limit everywhere
        return None
    try:                               # stay below physical VMEM (64 MiB on v7x)
        phys = pltpu.get_tpu_info().vmem_capacity_bytes
    except Exception:
        phys = 128 << 20
    return int(min(est, 100 << 20, 0.9 * phys))


def complex_attention(x, params, *, heads, attn_dtype=jnp.float32,
                      vmem_limit_bytes="auto"):
    """x: complex64 (B, S, D). Returns (complex64 (B, S, D), attn (B, H, S, S))."""
    B, S, D = x.shape
    assert D % heads == 0, "dim must be divisible by heads"
    head_dim = D // heads
    scale = 1.0 / math.sqrt(head_dim)

    # [real(x); imag(x)] stacked along rows -> (B, 2S, D); bf16 MXU operands
    # (all accumulation stays f32 inside the kernel).
    x_r = jnp.real(x).astype(jnp.float32)
    x_i = jnp.imag(x).astype(jnp.float32)
    x2 = jnp.concatenate([x_r, x_i], axis=1).astype(jnp.bfloat16)    # (B, 2S, D)

    # Head-major weight layout so per-head blocks come straight out of BlockSpec
    # (no in-kernel dynamic lane slicing, no qkv staging scratch):
    #   w_qkv[h] = (D, 3*hd) columns [wq_h | wk_h | wv_h];   w_o[h] = (hd, D).
    # The 1/sqrt(hd) score scale is folded into wq/bq in f32, before bf16 cast.
    def head_cols(w):                      # (D, D) cols=outputs -> (H, D, hd)
        return w.reshape(D, heads, head_dim).transpose(1, 0, 2)

    w_qkv = jnp.concatenate(
        [head_cols(params["wq"].T * scale),
         head_cols(params["wk"].T),
         head_cols(params["wv"].T)], axis=-1).astype(jnp.bfloat16)   # (H, D, 3hd)
    b_qkv = jnp.concatenate(
        [(params["bq"] * scale).reshape(heads, 1, head_dim),
         params["bk"].reshape(heads, 1, head_dim),
         params["bv"].reshape(heads, 1, head_dim)],
        axis=-1).astype(jnp.float32)                                 # (H, 1, 3hd)
    w_o = params["wo"].T.reshape(heads, head_dim, D).astype(jnp.bfloat16)  # (H, hd, D)
    b_o = params["bo"].reshape(1, D).astype(jnp.float32)

    kernel = functools.partial(_complex_attn_kernel, head_dim, S, D)

    ck = dict(dimension_semantics=("parallel", "arbitrary"))
    vmem = _resolve_vmem_limit(vmem_limit_bytes, S, D, head_dim, attn_dtype)
    if vmem is not None:
        ck["vmem_limit_bytes"] = vmem

    out2, attn = pl.pallas_call(
        kernel,
        out_shape=(
            jax.ShapeDtypeStruct((B, 2 * S, D), jnp.float32),
            jax.ShapeDtypeStruct((B, heads, S, S), attn_dtype),
        ),
        grid=(B, heads),
        in_specs=[
            pl.BlockSpec((1, 2 * S, D), lambda b, h: (b, 0, 0)),         # x2 (bf16)
            pl.BlockSpec((1, D, 3 * head_dim), lambda b, h: (h, 0, 0)),  # w_qkv
            pl.BlockSpec((1, 1, 3 * head_dim), lambda b, h: (h, 0, 0)),  # b_qkv
            pl.BlockSpec((1, head_dim, D), lambda b, h: (h, 0, 0)),      # w_o
            pl.BlockSpec((1, D), lambda b, h: (0, 0)),                   # b_o
        ],
        out_specs=(
            pl.BlockSpec((1, 2 * S, D), lambda b, h: (b, 0, 0)),         # out acc
            pl.BlockSpec((1, 1, S, S), lambda b, h: (b, h, 0, 0)),       # attn
        ),
        compiler_params=pltpu.CompilerParams(**ck),
    )(x2, w_qkv, b_qkv, w_o, b_o)

    out = (out2[:, :S, :] + 1j * out2[:, S:, :]).astype(jnp.complex64)
    return out, attn


def init_params(key, dim):
    """Deterministic init mimicking nn.Linear's uniform(-1/sqrt(dim), 1/sqrt(dim))."""
    bound = 1.0 / math.sqrt(dim)
    keys = jax.random.split(key, 8)

    def u(k, shape):
        return jax.random.uniform(k, shape, jnp.float32, -bound, bound)

    return {
        "wq": u(keys[0], (dim, dim)), "bq": u(keys[1], (dim,)),
        "wk": u(keys[2], (dim, dim)), "bk": u(keys[3], (dim,)),
        "wv": u(keys[4], (dim, dim)), "bv": u(keys[5], (dim,)),
        "wo": u(keys[6], (dim, dim)), "bo": u(keys[7], (dim,)),
    }


def _reference(x, params, *, heads):
    """Plain-JAX reference mirroring the kernel's precisions: bf16 matmul
    operands (scale folded into wq/bq before the bf16 cast), f32 accumulation,
    exact f32 softmax."""
    B, S, D = x.shape
    hd = D // heads
    scale = 1.0 / math.sqrt(hd)
    bf = jnp.bfloat16
    xr = jnp.real(x).astype(bf)
    xi = jnp.imag(x).astype(bf)

    wq = (params["wq"].T * scale).astype(bf); bq = params["bq"] * scale
    wk = params["wk"].T.astype(bf);           bk = params["bk"]
    wv = params["wv"].T.astype(bf);           bv = params["bv"]

    def proj(xx, w, b):   # (B,S,D) bf16 -> (B,H,S,hd) bf16
        y = jnp.dot(xx, w, preferred_element_type=jnp.float32) + b
        return y.reshape(B, S, heads, hd).transpose(0, 2, 1, 3).astype(bf)

    qr, qi = proj(xr, wq, bq), proj(xi, wq, bq)
    kr, ki = proj(xr, wk, bk), proj(xi, wk, bk)
    vr, vi = proj(xr, wv, bv), proj(xi, wv, bv)

    scores = (jnp.einsum("bhqd,bhkd->bhqk", qr, kr, preferred_element_type=jnp.float32)
              + jnp.einsum("bhqd,bhkd->bhqk", qi, ki, preferred_element_type=jnp.float32))
    attn = jax.nn.softmax(scores, axis=-1)
    a16 = attn.astype(bf)
    cr = jnp.einsum("bhqk,bhkd->bhqd", a16, vr,
                    preferred_element_type=jnp.float32).transpose(0, 2, 1, 3).reshape(B, S, D)
    ci = jnp.einsum("bhqk,bhkd->bhqd", a16, vi,
                    preferred_element_type=jnp.float32).transpose(0, 2, 1, 3).reshape(B, S, D)
    wo = params["wo"].T.astype(bf); bo = params["bo"]
    outr = jnp.dot(cr.astype(bf), wo, preferred_element_type=jnp.float32) + bo
    outi = jnp.dot(ci.astype(bf), wo, preferred_element_type=jnp.float32) + bo
    return (outr + 1j * outi).astype(jnp.complex64), attn


if __name__ == "__main__":
    B, S, D, H = 2, 8, 32, 4

    key = jax.random.PRNGKey(0)
    k_x, k_p = jax.random.split(key)
    kr_, ki_ = jax.random.split(k_x)
    x = (jax.random.normal(kr_, (B, S, D), jnp.float32)
         + 1j * jax.random.normal(ki_, (B, S, D), jnp.float32)).astype(jnp.complex64)

    params = init_params(k_p, D)

    out, attn = complex_attention(x, params, heads=H)
    out = jax.block_until_ready(out)
    attn = jax.block_until_ready(attn)
    assert out.shape == (B, S, D) and attn.shape == (B, H, S, S)

    # Validate against a plain-JAX reference mirroring the kernel's precisions.
    out_ref, attn_ref = _reference(x, params, heads=H)
    err_out = float(jnp.max(jnp.abs(out - out_ref)))
    err_attn = float(jnp.max(jnp.abs(attn - attn_ref)))
    assert err_out < 5e-2, f"out max abs err {err_out}"
    assert err_attn < 2e-2, f"attn max abs err {err_attn}"

    # Exact softmax normalisation: returned probability rows sum to 1.
    row_err = float(jnp.max(jnp.abs(jnp.sum(attn, axis=-1) - 1.0)))
    assert row_err < 1e-3, f"attn rows not normalised: {row_err}"

    print("KERNEL_OK")
</pallas_src>

<mosaic_0001>
module attributes {stable_mosaic.version = 11 : i64} {
  func.func @_complex_attn_kernel(%arg0: i32, %arg1: i32, %arg2: memref<1x16x32xbf16, #tpu.memory_space<vmem>>, %arg3: memref<1x32x24xbf16, #tpu.memory_space<vmem>>, %arg4: memref<1x1x24xf32, #tpu.memory_space<vmem>>, %arg5: memref<1x8x32xbf16, #tpu.memory_space<vmem>>, %arg6: memref<1x32xf32, #tpu.memory_space<vmem>>, %arg7: memref<1x16x32xf32, #tpu.memory_space<vmem>>, %arg8: memref<1x1x8x8xf32, #tpu.memory_space<vmem>>) attributes {dimension_semantics = [#tpu.dimension_semantics<parallel>, #tpu.dimension_semantics<arbitrary>], iteration_bounds = array<i64: 2, 4>, scalar_prefetch = 0 : i64, scratch_operands = 0 : i64, tpu.core_type = #tpu.core_type<tc>, window_params = [{transform_indices = @transform_0, window_bounds = array<i64: 1, 16, 32>}, {transform_indices = @transform_1, window_bounds = array<i64: 1, 32, 24>}, {transform_indices = @transform_2, window_bounds = array<i64: 1, 1, 24>}, {transform_indices = @transform_3, window_bounds = array<i64: 1, 8, 32>}, {pipeline_mode = #tpu.pipeline_mode<synchronous>, transform_indices = @transform_4, window_bounds = array<i64: 1, 32>}, {transform_indices = @transform_5, window_bounds = array<i64: 1, 16, 32>}, {transform_indices = @transform_6, window_bounds = array<i64: 1, 1, 8, 8>}]} {
    %c0_i32 = arith.constant 0 : i32
    %0 = arith.cmpi eq, %arg1, %c0_i32 : i32
    %1 = arith.extui %0 : i1 to i32
    %c0_i32_0 = arith.constant 0 : i32
    %2 = arith.cmpi ne, %1, %c0_i32_0 : i32
    scf.if %2 {
      %c0_35 = arith.constant 0 : index
      %c0_36 = arith.constant 0 : index
      %57 = vector.load %arg6[%c0_35, %c0_36] : memref<1x32xf32, #tpu.memory_space<vmem>>, vector<1x32xf32>
      %58 = vector.shape_cast %57 : vector<1x32xf32> to vector<1x32xf32>
      %59 = vector.broadcast %58 : vector<1x32xf32> to vector<16x32xf32>
      %c0_37 = arith.constant 0 : index
      %c0_38 = arith.constant 0 : index
      %c0_39 = arith.constant 0 : index
      %60 = vector.load %arg7[%c0_37, %c0_38, %c0_39] : memref<1x16x32xf32, #tpu.memory_space<vmem>>, vector<1x16x32xf32>
      %61 = vector.shape_cast %60 : vector<1x16x32xf32> to vector<16x32xf32>
      %62 = vector.shape_cast %59 : vector<16x32xf32> to vector<1x16x32xf32>
      tpu.vector_store %arg7[%c0_37, %c0_38, %c0_39], %62 {strides = array<i32>} : memref<1x16x32xf32, #tpu.memory_space<vmem>>, vector<1x16x32xf32>,
    } else {
    }
    %c0 = arith.constant 0 : index
    %c0_1 = arith.constant 0 : index
    %c0_2 = arith.constant 0 : index
    %3 = vector.load %arg2[%c0, %c0_1, %c0_2] : memref<1x16x32xbf16, #tpu.memory_space<vmem>>, vector<1x16x32xbf16>
    %4 = vector.shape_cast %3 : vector<1x16x32xbf16> to vector<16x32xbf16>
    %c0_3 = arith.constant 0 : index
    %c0_4 = arith.constant 0 : index
    %c0_5 = arith.constant 0 : index
    %5 = vector.load %arg3[%c0_3, %c0_4, %c0_5] : memref<1x32x24xbf16, #tpu.memory_space<vmem>>, vector<1x32x24xbf16>
    %6 = vector.shape_cast %5 : vector<1x32x24xbf16> to vector<32x24xbf16>
    %cst = arith.constant dense<0.000000e+00> : vector<16x24xf32>
    %7 = tpu.matmul %4, %6, %cst {dimension_numbers = #tpu.dot_dimension_numbers<[1], [0], [0], [1], [0, 0, 1, 1], [], []>} : vector<16x32xbf16>, vector<32x24xbf16>, vector<16x24xf32> -> vector<16x24xf32>
    %c0_6 = arith.constant 0 : index
    %c0_7 = arith.constant 0 : index
    %c0_8 = arith.constant 0 : index
    %8 = vector.load %arg4[%c0_6, %c0_7, %c0_8] : memref<1x1x24xf32, #tpu.memory_space<vmem>>, vector<1x1x24xf32>
    %9 = vector.shape_cast %8 : vector<1x1x24xf32> to vector<1x24xf32>
    %10 = vector.broadcast %9 : vector<1x24xf32> to vector<16x24xf32>
    %11 = arith.addf %7, %10 : vector<16x24xf32>
    %12 = arith.truncf %11 : vector<16x24xf32> to vector<16x24xbf16>
    %13 = vector.extract_strided_slice %12 {offsets = [0, 0], sizes = [8, 8], strides = [1, 1]} : vector<16x24xbf16> to vector<8x8xbf16>
    %14 = vector.extract_strided_slice %12 {offsets = [8, 0], sizes = [8, 8], strides = [1, 1]} : vector<16x24xbf16> to vector<8x8xbf16>
    %15 = vector.extract_strided_slice %12 {offsets = [0, 8], sizes = [8, 8], strides = [1, 1]} : vector<16x24xbf16> to vector<8x8xbf16>
    %16 = vector.extract_strided_slice %12 {offsets = [8, 8], sizes = [8, 8], strides = [1, 1]} : vector<16x24xbf16> to vector<8x8xbf16>
    %17 = vector.extract_strided_slice %12 {offsets = [0, 16], sizes = [8, 8], strides = [1, 1]} : vector<16x24xbf16> to vector<8x8xbf16>
    %18 = vector.extract_strided_slice %12 {offsets = [8, 16], sizes = [8, 8], strides = [1, 1]} : vector<16x24xbf16> to vector<8x8xbf16>
    %19 = tpu.concatenate %13, %14 in 1 : vector<8x8xbf16>, vector<8x8xbf16> -> vector<8x16xbf16>
    %20 = tpu.concatenate %15, %16 in 1 : vector<8x8xbf16>, vector<8x8xbf16> -> vector<8x16xbf16>
    %cst_9 = arith.constant dense<0.000000e+00> : vector<8x8xf32>
    %21 = tpu.matmul %19, %20, %cst_9 {dimension_numbers = #tpu.dot_dimension_numbers<[1], [1], [0], [0], [0, 0, 1, 0], [], []>} : vector<8x16xbf16>, vector<8x16xbf16>, vector<8x8xf32> -> vector<8x8xf32>
    %cst_10 = arith.constant dense<0xFF800000> : vector<8xf32>
    %22 = vector.multi_reduction <maximumf>, %21, %cst_10 [1] : vector<8x8xf32> to vector<8xf32>
    %23 = vector.shape_cast %22 : vector<8xf32> to vector<8x1xf32>
    %24 = vector.broadcast %23 : vector<8x1xf32> to vector<8x8xf32>
    %25 = arith.subf %21, %24 : vector<8x8xf32>
    %26 = math.exp %25 : vector<8x8xf32>
    %cst_11 = arith.constant dense<0.000000e+00> : vector<8xf32>
    %27 = vector.multi_reduction <add>, %26, %cst_11 [1] : vector<8x8xf32> to vector<8xf32>
    %28 = vector.shape_cast %27 : vector<8xf32> to vector<8x1xf32>
    %cst_12 = arith.constant 1.000000e+00 : f32
    %29 = vector.broadcast %cst_12 : f32 to vector<8x1xf32>
    %30 = arith.divf %29, %28 : vector<8x1xf32>
    %31 = vector.broadcast %30 : vector<8x1xf32> to vector<8x8xf32>
    %32 = arith.mulf %26, %31 : vector<8x8xf32>
    %c0_13 = arith.constant 0 : index
    %c0_14 = arith.constant 0 : index
    %c0_15 = arith.constant 0 : index
    %c0_16 = arith.constant 0 : index
    %33 = vector.load %arg8[%c0_13, %c0_14, %c0_15, %c0_16] : memref<1x1x8x8xf32, #tpu.memory_space<vmem>>, vector<1x1x8x8xf32>
    %34 = vector.shape_cast %33 : vector<1x1x8x8xf32> to vector<8x8xf32>
    %35 = vector.shape_cast %32 : vector<8x8xf32> to vector<1x1x8x8xf32>
    tpu.vector_store %arg8[%c0_13, %c0_14, %c0_15, %c0_16], %35 {strides = array<i32>} : memref<1x1x8x8xf32, #tpu.memory_space<vmem>>, vector<1x1x8x8xf32>,
    %36 = arith.truncf %32 : vector<8x8xf32> to vector<8x8xbf16>
    %cst_17 = arith.constant dense<0.000000e+00> : vector<8x8xf32>
    %37 = tpu.matmul %36, %17, %cst_17 {dimension_numbers = #tpu.dot_dimension_numbers<[1], [0], [0], [1], [0, 0, 1, 1], [], []>} : vector<8x8xbf16>, vector<8x8xbf16>, vector<8x8xf32> -> vector<8x8xf32>
    %38 = arith.truncf %37 : vector<8x8xf32> to vector<8x8xbf16>
    %cst_18 = arith.constant dense<0.000000e+00> : vector<8x8xf32>
    %39 = tpu.matmul %36, %18, %cst_18 {dimension_numbers = #tpu.dot_dimension_numbers<[1], [0], [0], [1], [0, 0, 1, 1], [], []>} : vector<8x8xbf16>, vector<8x8xbf16>, vector<8x8xf32> -> vector<8x8xf32>
    %40 = arith.truncf %39 : vector<8x8xf32> to vector<8x8xbf16>
    %c0_19 = arith.constant 0 : index
    %c0_20 = arith.constant 0 : index
    %c0_21 = arith.constant 0 : index
    %41 = vector.load %arg5[%c0_19, %c0_20, %c0_21] : memref<1x8x32xbf16, #tpu.memory_space<vmem>>, vector<1x8x32xbf16>
    %42 = vector.shape_cast %41 : vector<1x8x32xbf16> to vector<8x32xbf16>
    %c0_22 = arith.constant 0 : index
    %c0_23 = arith.constant 0 : index
    %c0_24 = arith.constant 0 : index
    %43 = vector.load %arg7[%c0_22, %c0_23, %c0_24] : memref<1x16x32xf32, #tpu.memory_space<vmem>>, vector<1x8x32xf32>
    %44 = vector.shape_cast %43 : vector<1x8x32xf32> to vector<8x32xf32>
    %cst_25 = arith.constant dense<0.000000e+00> : vector<8x32xf32>
    %45 = tpu.matmul %38, %42, %cst_25 {dimension_numbers = #tpu.dot_dimension_numbers<[1], [0], [0], [1], [0, 0, 1, 1], [], []>} : vector<8x8xbf16>, vector<8x32xbf16>, vector<8x32xf32> -> vector<8x32xf32>
    %46 = arith.addf %44, %45 : vector<8x32xf32>
    %c0_26 = arith.constant 0 : index
    %c0_27 = arith.constant 0 : index
    %c0_28 = arith.constant 0 : index
    %47 = vector.load %arg7[%c0_26, %c0_27, %c0_28] : memref<1x16x32xf32, #tpu.memory_space<vmem>>, vector<1x8x32xf32>
    %48 = vector.shape_cast %47 : vector<1x8x32xf32> to vector<8x32xf32>
    %49 = vector.shape_cast %46 : vector<8x32xf32> to vector<1x8x32xf32>
    tpu.vector_store %arg7[%c0_26, %c0_27, %c0_28], %49 {strides = array<i32>} : memref<1x16x32xf32, #tpu.memory_space<vmem>>, vector<1x8x32xf32>,
    %c0_29 = arith.constant 0 : index
    %c8 = arith.constant 8 : index
    %c0_30 = arith.constant 0 : index
    %50 = vector.load %arg7[%c0_29, %c8, %c0_30] : memref<1x16x32xf32, #tpu.memory_space<vmem>>, vector<1x8x32xf32>
    %51 = vector.shape_cast %50 : vector<1x8x32xf32> to vector<8x32xf32>
    %cst_31 = arith.constant dense<0.000000e+00> : vector<8x32xf32>
    %52 = tpu.matmul %40, %42, %cst_31 {dimension_numbers = #tpu.dot_dimension_numbers<[1], [0], [0], [1], [0, 0, 1, 1], [], []>} : vector<8x8xbf16>, vector<8x32xbf16>, vector<8x32xf32> -> vector<8x32xf32>
    %53 = arith.addf %51, %52 : vector<8x32xf32>
    %c0_32 = arith.constant 0 : index
    %c8_33 = arith.constant 8 : index
    %c0_34 = arith.constant 0 : index
    %54 = vector.load %arg7[%c0_32, %c8_33, %c0_34] : memref<1x16x32xf32, #tpu.memory_space<vmem>>, vector<1x8x32xf32>
    %55 = vector.shape_cast %54 : vector<1x8x32xf32> to vector<8x32xf32>
    %56 = vector.shape_cast %53 : vector<8x32xf32> to vector<1x8x32xf32>
    tpu.vector_store %arg7[%c0_32, %c8_33, %c0_34], %56 {strides = array<i32>} : memref<1x16x32xf32, #tpu.memory_space<vmem>>, vector<1x8x32xf32>,
    return
  }
  func.func @transform_0(%arg0: i32, %arg1: i32) -> (i32, i32, i32) {
    %c0_i32 = arith.constant 0 : i32
    %c0_i32_0 = arith.constant 0 : i32
    %c0_i32_1 = arith.constant 0 : i32
    return %arg0, %c0_i32, %c0_i32_0 : i32, i32, i32
  }
  func.func @transform_1(%arg0: i32, %arg1: i32) -> (i32, i32, i32) {
    %c0_i32 = arith.constant 0 : i32
    %c0_i32_0 = arith.constant 0 : i32
    %c0_i32_1 = arith.constant 0 : i32
    return %arg1, %c0_i32, %c0_i32_0 : i32, i32, i32
  }
  func.func @transform_2(%arg0: i32, %arg1: i32) -> (i32, i32, i32) {
    %c0_i32 = arith.constant 0 : i32
    %c0_i32_0 = arith.constant 0 : i32
    %c0_i32_1 = arith.constant 0 : i32
    return %arg1, %c0_i32, %c0_i32_0 : i32, i32, i32
  }
  func.func @transform_3(%arg0: i32, %arg1: i32) -> (i32, i32, i32) {
    %c0_i32 = arith.constant 0 : i32
    %c0_i32_0 = arith.constant 0 : i32
    %c0_i32_1 = arith.constant 0 : i32
    return %arg1, %c0_i32, %c0_i32_0 : i32, i32, i32
  }
  func.func @transform_4(%arg0: i32, %arg1: i32) -> (i32, i32) {
    %c0_i32 = arith.constant 0 : i32
    %c0_i32_0 = arith.constant 0 : i32
    %c0_i32_1 = arith.constant 0 : i32
    return %c0_i32, %c0_i32_0 : i32, i32
  }
  func.func @transform_5(%arg0: i32, %arg1: i32) -> (i32, i32, i32) {
    %c0_i32 = arith.constant 0 : i32
    %c0_i32_0 = arith.constant 0 : i32
    %c0_i32_1 = arith.constant 0 : i32
    return %arg0, %c0_i32, %c0_i32_0 : i32, i32, i32
  }
  func.func @transform_6(%arg0: i32, %arg1: i32) -> (i32, i32, i32, i32) {
    %c0_i32 = arith.constant 0 : i32
    %c0_i32_0 = arith.constant 0 : i32
    %c0_i32_1 = arith.constant 0 : i32
    return %arg0, %arg1, %c0_i32, %c0_i32_0 : i32, i32, i32, i32
  }
}

</mosaic_0001>

<bundles_post_ra>
// kernel: tpu_custom_call.1
= control target key start
LH: loop header
LB: loop body
LE: loop exit
PB: predicated region body
PF: predicated region fallthrough
CT: control target
= control target key end

     0   :  { %s1555_s0 = inlined_call_operand.vmem [shape: bf16[2,16,32], index: 0, kind: input, shape index: {}]   ;;  %s1556_s1 = inlined_call_operand.vmem [shape: bf16[4,32,24], index: 1, kind: input, shape index: {}]   ;;  %s1557_s2 = inlined_call_operand.vmem [shape: f32[4,1,24], index: 2, kind: input, shape index: {}]   ;;  %s1558_s3 = inlined_call_operand.vmem [shape: bf16[4,8,32], index: 3, kind: input, shape index: {}]   ;;  %s1559_s4 = inlined_call_operand.vmem [shape: f32[1,32], index: 4, kind: input, shape index: {}]   ;;  %s1560_s5 = inlined_call_operand.hbm [shape: f32[2,16,32], index: 5, kind: output, shape index: {0}]   ;;  %s1561_s6 = inlined_call_operand.hbm [shape: f32[2,4,8,8], index: 6, kind: output, shape index: {1}]  }
   0x1   :  { %1579 = sst [smem:[#allocation22_spill]] %s1560_s5 }
   0x2   :  { %12 = vsyncpa [#allocation3], 0 }
   0x3   :  { %14 = vsyncpa [#allocation3 + $0x1], 0 }
   0x4   :  { %15 = vsyncpa [#allocation5], 0 }
   0x5   :  { %17 = vsyncpa [#allocation5 + $0x1], 0  ;;  %s1249_s21 = smov 0   ;;  %s1251_s22 = smov 0  }
   0x6   :  { %s1253_s23 = smov 0   ;;  %s1255_s24 = smov 0  }
   0x7   :  { %s1257_s25 = smov 0   ;;  %s1259_s26 = smov 0  }
   0x8   :  { %s1261_s27 = smov 0   ;;  %s1263_s28 = smov 0  }
   0x9   :  { %s1265_s29 = smov 0   ;;  %s1267_s30 = smov 0  }
   0xa   :  { %s1269_s7 = smov 0  }
   0xb LB: > { %1580 = sst [smem:[#allocation8_spill]] %s1164_s21  ;;  %s855_s8 = sadd.s32 4294967295, %s1204_s7   ;;  %s1204_s7 = sphi %s1269_s7, %s23_s7   ;;  %s1200_s30 = sphi %s1267_s30, %s1616_s30   ;;  %s1196_s29 = sphi %s1265_s29, %s1621_s29   ;;  %s1192_s28 = sphi %s1263_s28, %s1614_s28   ;;  %s1188_s27 = sphi %s1261_s27, %s1613_s27   ;;  %s1184_s26 = sphi %s1259_s26, %s1612_s26   ;;  %s1180_s25 = sphi %s1257_s25, %s1620_s25   ;;  %s1176_s24 = sphi %s1255_s24, %s1619_s24   ;;  %s1172_s23 = sphi %s1253_s23, %s1610_s23   ;;  %s1168_s22 = sphi %s1251_s22, %s1618_s22   ;;  %s1164_s21 = sphi %s1249_s21, %s1617_s21  }
   0xc   : > { %1581 = sst [smem:[#allocation9_spill]] %s1172_s23  ;;  %s856_s9 = sadd.s32 4294967294, %s1204_s7  }
   0xd   : > { %1582 = sst [smem:[#allocation10_spill]] %s1176_s24  ;;  %s32_s10 = sadd.s32 1, %s1196_s29 }
   0xe   : > { %1583 = sst [smem:[#allocation11_spill]] %s1184_s26  ;;  %s35_s11 = sadd.s32 1, %s1200_s30 }
   0xf   : > { %1584 = sst [smem:[#allocation12_spill]] %s1196_s29  ;;  %p33_p0 = scmp.ge.s32.totalorder %s32_s10, 4 }
  0x10   : > { %1585 = sst [smem:[#allocation13_spill]] %s1200_s30  ;;  %s167_s12 = sadd.s32 1, %s1184_s26 }
  0x11   : > { %1586 = sst [smem:[#allocation14_spill]] %s1204_s7  ;;  %p177_p1 = scmp.ne.s32.totalorder %s1184_s26, %s1180_s25 }
  0x12   : > { %p1311_p2 = scmp.eq.s32.totalorder %s855_s8, 7  ;;  %s1623_s10 = smov (%p33_p0, %s32_s10), 0 }
  0x13   : > { %1588 = sst [smem:[#allocation15_spill]] %s1623_s10  ;;  %s1625_s11 = smov (!%p33_p0, %s35_s11), %s1200_s30 }
  0x14   : > { %p1320_p3 = por %p1311_p2, %p177_p1  ;;  %p183_p4 = scmp.ne.s32.totalorder %s1180_s25, %s1176_s24 }
  0x15   : > { %p37_p5 = scmp.ge.s32.totalorder %s1625_s11, 2  ;;  %p1326_p6 = scmp.eq.s32.totalorder %s856_s9, 7 }
  0x16   : > { %s1589_s14 = scalar_select %p1320_p3, 1, 0 }
  0x17   : > { %s191_s16 = ssub.s32 %s1196_s29, %s1623_s10  ;;  %s195_s17 = sadd.s32 1, %s1172_s23 }
  0x18   : > { %1590 = sst [smem:[#allocation16_spill]] %s1589_s14  ;;  %s1627_s11 = smov (%p37_p5, %s1625_s11), 0 }
  0x19   : > { %1592 = sst [smem:[#allocation17_spill]] %s1627_s11  ;;  %p1337_p7 = por %p1326_p6, %p183_p4 }
  0x1a   : > { %p205_p8 = scmp.ne.s32.totalorder %s1172_s23, %s1168_s22  ;;  %s164_s19 = ssub.s32 %s1200_s30, %s1627_s11 }
  0x1b   : > { %s1593_s18 = scalar_select %p1337_p7, 1, 0 }
  0x1c   : > { %p211_p9 = scmp.ne.s32.totalorder %s1168_s22, %s1164_s21  ;;  %p165_p10 = scmp.eq.s32.totalorder %s164_s19, 0 }
  0x1d   : > { %1594 = sst [smem:[#allocation18_spill]] %s1593_s18  ;;  %s192_s20 = sor.u32 %s191_s16, %s164_s19 }
  0x1e   : > { %p193_p11 = scmp.eq.s32.totalorder %s192_s20, 0  ;;  %p1349_p12 = por %p205_p8, %p1311_p2 }
  0x1f   : > { %s1354_s9 = scalar_select %p165_p10, %s1184_s26, %s167_s12  }
  0x20   : > { %s1357_s10 = scalar_select %p193_p11, %s1172_s23, %s195_s17  }
  0x21   : > { %1596 = sst [smem:[#allocation19_spill]] %s1354_s9  ;;  %p1361_p13 = por %p211_p9, %p1326_p6 }
  0x22   : > { %1597 = sst [smem:[#allocation20_spill]] %s1357_s10  ;;  %p859_p0 = scmp.ge.s32.totalorder %s1204_s7, 1 }
  0x23   : > { %s1598_s29 = scalar_select %p1361_p13, 1, 0 }
  0x24   : > { %p262_p1 = scmp.lt.s32.totalorder %s1204_s7, 9 }
  0x25   : > { %1599 = sst [smem:[#allocation21_spill]] %s1598_s29 }
  0x26   : > { %p263_p4 = pnand %p859_p0, %p262_p1 }
  0x27   : > { %s1567_s12 = sand.u32 (!%p263_p4), 1, %s1180_s25   ;;  %s1568_s13 = sand.u32 (!%p263_p4), 1, %s1168_s22  }
  0x28   : > { %266 = sbr.rel (%p263_p4) target bundleno = 1381 (0x565), region = 40  ;;  %s860_s15 = sshll.u32 (!%p263_p4), %s1567_s12, 4 }
  0x29   : > { %s1373_s16 = sshll.u32 (!%p263_p4), %s1568_s13, 3  ;;  %p309_p2 = scmp.lt.s32.totalorder (!%p263_p4), %s1192_s28, 1 }
  0x2a   : > { %p314_p5 = scmp.lt.s32.totalorder (!%p263_p4), %s1188_s27, 3  ;;  %s308_s5 = scalar_lea.vmem (!%p263_p4), [#allocation4], %s1373_s16 }
  0x2b   : > { %p867_p6 = scmp.ne.s32.totalorder (!%p263_p4), %s1188_s27, 0 }
  0x2f   : > { %s310_s17 = scalar_select %p309_p2, %s1192_s28, 1 }
  0x30   : > { %s1379_s19 = scalar_select %p314_p5, %s1188_s27, 3 }
  0x31   : > { %s887_s20 = sshll.u32 %s310_s17, 3  ;;  %s1398_s17 = scalar_lea.vmem [#allocation2], %s860_s15  ;;  %v868_v0 = vld [vmem:[%s1559_s4] ss:$0 sm:$0xff] (!%p867_p6)  ;;  %vm338_vm0 = vcmask (!%p867_p6), 261120  }
  0x32   : > { %s313_s9 = scalar_lea.vmem %s1555_s0, %s887_s20  ;;  %s888_s26 = sshll.u32 %s1379_s19, 4  ;;  %339 = vst.msk [vmem:[%s1398_s17] sm:$0xff] (!%p867_p6), %vm338_vm0, %v868_v0  ;;  %340 = vst.msk [vmem:[%s1398_s17 + $0x8] sm:$0xff] (!%p867_p6), %vm338_vm0, %v868_v0 }
  0x33   : > { %s318_s13 = scalar_lea.vmem %s1556_s1, %s888_s26  ;;  %s321_s21 = scalar_lea.vmem %s1557_s2, %s1379_s19 }
  0x34   : > { %s866_s18 = sshll.u32 %s1379_s19, 2  ;;  %330 = sbr.rel (%p867_p6) target bundleno = 59 (0x3b), region = 44 }
  0x35   : > { %s1396_s14 = scalar_lea.vmem %s1558_s3, %s866_s18 }
  0x3b PF: > { %v1047_v1 = vld [vmem:[%s318_s13] sm:$0xff]   ;;  %v1206_v2 = vmov 0.0   ;;  %v1048_v3 = vld [vmem:[%s318_s13 + $0x8] sm:$0xff]   ;;  %vm1207_vm1 = vmmov 0   ;;  %vm371_vm2 = vcmask 261120   ;;  %s1208_s23 = smov 120  }
  0x3c   : > { %903 = vmatprep.subr.bf16.mxu0 %v1206_v2  ;;  %911 = vmatprep.subr.bf16.mxu1 %v1206_v2  ;;  %v1049_v4 = vld [vmem:[%s313_s9] sm:$0xff]   ;;  %s1209_s24 = smov 8   ;;  %s1210_s26 = smov 112   ;;  %vm421_vm3 = vcmask 64512   ;;  %vm430_vm4 = vcmask 130048   ;;  %vm494_vm5 = vcmask 1043456  }
  0x3d   : > { %904 = vmatpush3.bf16.msra.mxu0 %v1047_v1  ;;  %907 = vmatprep.mubr.msk.bf16.mxu0 %vm1207_vm1, %v1206_v2  ;;  %v869_v5 = vld [vmem:[%s321_s21] ss:$0 sm:$0xff]  ;;  %s883_s21 = sshll.u32 %s1192_s28, 2  ;;  %s718_s9 = sshll.u32 %s308_s5, 4  ;;  %s719_s9 = int_to_ptr.vmem [resolvable:$true] %s718_s9 }
  0x3e   : > { %905 = vmatprep.subr.bf16.mxu0 %v1206_v2  ;;  %913 = vmatprep.mubr.msk.bf16.mxu1 %vm1207_vm1, %v1206_v2  ;;  %v585_v35 = vld [vmem:[%s1396_s14] sm:$0xf]  ;;  %s714_s29 = sadd.s32 %s1188_s27, %s883_s21  ;;  %s1600_s12 = sand.u32 1, %s1168_s22  }
  0x3f   : > { %v591_v38 = vsel %vm494_vm5, %v585_v35, 0  ;;  %s884_s7 = sshll.u32 %s714_s29, 7  ;;  %s687_s13 = scalar_lea.sflag [#allocation5], %s1600_s12 }
  0x40   : > { %s1450_s18 = scalar_lea.hbm %s1561_s6, %s884_s7  ;;  %s1054_s15 = scalar_lea.vmem %s719_s9, 128 }
  0x41   : > { %906 = vmatpush3.bf16.msra.mxu0 %v1048_v3  ;;  %p1055_p8 = scmp.ne.s32.totalorder %s719_s9, %s1054_s15  ;;  %s1211_s19 = smov [#allocation4]  }
  0x42   : > { %917 = vmatprep.subr.bf16.mxu0 %v1206_v2  ;;  %s1058_s20 = sshll.u32 %s1211_s19, 4  ;;  %s1059_s20 = int_to_ptr.vmem [resolvable:$false] %s1058_s20 }
  0x43   : > { %p1056_p9 = pnand %p1055_p8, %p1349_p12  ;;  %s1060_s27 = scalar_lea.vmem %s1059_s20, 256 }
  0x44   : > { %908 = vmatmul.mubr.msk.bf16.vlgmr.msra.gmra.mrb[0].mxu0 %vm371_vm2, %v1049_v4  ;;  %p1061_p11 = scmp.lt.s32.totalorder %s719_s9, %s1059_s20  ;;  %p1062_p0 = scmp.lt.s32.totalorder %s1060_s27, %s1054_s15 }
  0x45   : > { %919 = vmatprep.mubr.msk.bf16.mxu0 %vm1207_vm1, %v1206_v2  ;;  %p1057_p10 = pneg %p1056_p9 }
  0x46   : > { %p1063_p1 = por %p1062_p0, %p1061_p11 }
  0x48   : > { %p1064_p4 = pnand %p1063_p1, %p1057_p10 }
 0x117   : > { %v409_v6 = vpop.f32.mrb[0].mxu0 }
 0x118   : > { %v909_v7 = vpop.f32.mrb[1].mxu0  ;;  %v410_v9 = vadd.f32 %v869_v5, %v409_v6 }
 0x119   : > { %v412_v8 = vpop.f32.mrb[2].mxu0 }
 0x11a   : > { %v413_v10 = vadd.f32 %v869_v5, %v412_v8  ;;  %v910_v11 = vpop.f32.mrb[3].mxu0 }
 0x11c   : > { %v416_v12 = vpack.c.bf16 %v413_v10, %v410_v9 }
 0x11e   : > { %425 = vrot.lane.b32.xlu0 %v416_v12, %s1208_s23  ;;  %v418_v13 = vrot.slane %v416_v12, 4 }
 0x122   : > { %419 = vrot.lane.b32.xlu0 %v418_v13, %s1209_s24 }
 0x126   : > { %489 = vrot.lane.b32.xlu0 %v416_v12, %s1210_s26 }
 0x190   : > { %v426_v14 = vpop.permute.xlu0 %425 }
 0x191   : > { %v429_v15 = vsel %vm421_vm3, %v426_v14, %v418_v13 }
 0x192   : > { %v433_v16 = vsel %vm430_vm4, %v429_v15, 0 }
 0x193   : > { %912 = vmatpush3.bf16.xpose.msra.mxu1 %v433_v16 }
 0x194   : > { %v420_v17 = vpop.permute.xlu0 %419  ;;  %923 = vmatprep.subr.bf16.mxu1 %v1206_v2 }
 0x195   : > { %v424_v19 = vsel %vm421_vm3, %v416_v12, %v420_v17 }
 0x198   : > { %v490_v18 = vpop.permute.xlu0 %489 }
 0x199   : > { %v496_v20 = vsel %vm494_vm5, %v490_v18, 0 }
 0x19a   : > { %914 = vmatmul.mubr.msk.bf16.vlgmr.msra.gmra.mrb[0].mxu1 %vm430_vm4, %v424_v19  ;;  %918 = vmatpush3.bf16.msra.mxu0 %v496_v20 }
 0x19b   : > { %925 = vmatprep.mubr.msk.bf16.mxu1 %vm1207_vm1, %v1206_v2  ;;  %929 = vmatprep.subr.bf16.mxu0 %v1206_v2 }
 0x26d   : > { %v469_v21 = vpop.f32.mrb[0].mxu1 }
 0x26e   : > { %v915_v22 = vpop.f32.mrb[1].mxu1  ;;  %v475_v23 = vsel %vm421_vm3, %v469_v21, -inf }
 0x26f   : > { %476 = vmax.xlane.f32.xlu1 %v475_v23  ;;  %v472_v24 = vpop.f32.mrb[2].mxu1 }
 0x270   : > { %v916_v25 = vpop.f32.mrb[3].mxu1 }
 0x2fc   : > { %v477_v26 = vpop.xlane.xlu1 %476 }
 0x2fd   : > { %v478_v27 = vsub.f32 %v469_v21, %v477_v26 }
 0x2ff   : > { %v479_v28 = vmul.f32 1.442695, %v478_v27 }
 0x301   : > { %1050 = vpow2.f32 %v479_v28 }
 0x30b   : > { %v1051_v29 = vpop.eup %1050 }
 0x30c   : > { %v481_v30 = vsel %vm421_vm3, %v1051_v29, 0.0 }
 0x30d   : > { %482 = vadd.xlane.f32.xlu1 %v481_v30 }
 0x31e   : > { %539 = vrot.lane.b32.xlu1 %v418_v13, %s1210_s26 }
 0x39a   : > { %v483_v31 = vpop.xlane.xlu1 %482 }
 0x39b   : > { %1052 = vrcp.f32 %v483_v31 }
 0x39e   : > { %v540_v32 = vpop.permute.xlu1 %539 }
 0x39f   : > { %v542_v33 = vsel %vm494_vm5, %v540_v32, 0 }
 0x3a0   : > { %924 = vmatpush3.bf16.msra.mxu1 %v542_v33 }
 0x3a1   : > { %935 = vmatprep.subr.bf16.mxu1 %v1206_v2 }
 0x3a5   : > { %v1053_v34 = vpop.eup %1052 }
 0x3a6   : > { %v486_v36 = vmul.f32 %v1053_v34, %v1051_v29 }
 0x3a8   : > { %487 = vst.msk [vmem:[%s308_s5] sm:$0xff] %vm421_vm3, %v486_v36  ;;  %v488_v37 = vpack.c.bf16 %v486_v36, %v486_v36 }
 0x3aa   : > { %920 = vmatmul.mubr.msk.bf16.vlgmr.msra.gmra.mrb[4].mxu0 %vm421_vm3, %v488_v37  ;;  %926 = vmatmul.mubr.msk.bf16.vlgmr.msra.gmra.mrb[4].mxu1 %vm421_vm3, %v488_v37 }
 0x3ab   : > { %930 = vmatpush3.bf16.msra.mxu0 %v591_v38  ;;  %936 = vmatpush3.bf16.msra.mxu1 %v591_v38 }
 0x3ac   : > { %931 = vmatprep.mubr.msk.bf16.mxu0 %vm1207_vm1, %v1206_v2  ;;  %937 = vmatprep.mubr.msk.bf16.mxu1 %vm1207_vm1, %v1206_v2 }
 0x47d   : > { %v532_v39 = vpop.f32.mrb[4].mxu0  ;;  %v578_v40 = vpop.f32.mrb[4].mxu1 }
 0x47e   : > { %v538_v41 = vpack.c.bf16 %v532_v39, %v532_v39  ;;  %v584_v42 = vpack.c.bf16 %v578_v40, %v578_v40  ;;  %v921_v43 = vpop.f32.mrb[5].mxu0  ;;  %v927_v44 = vpop.f32.mrb[5].mxu1 }
 0x47f   : > { %v535_v45 = vpop.f32.mrb[6].mxu0  ;;  %v581_v46 = vpop.f32.mrb[6].mxu1 }
 0x480   : > { %v922_v47 = vpop.f32.mrb[7].mxu0  ;;  %v928_v48 = vpop.f32.mrb[7].mxu1  ;;  %932 = vmatmul.mubr.msk.bf16.vlgmr.msra.gmra.mrb[8].mxu0 %vm421_vm3, %v538_v41  ;;  %938 = vmatmul.mubr.msk.bf16.vlgmr.msra.gmra.mrb[8].mxu1 %vm421_vm3, %v584_v42 }
 0x481   : > { %1067 = shalt.err (!%p1064_p4)
}
 0x482   : > { %s1068_s5 = scalar_lea.hbm %s1450_s18, 128  ;;  %s1072_s11 = scalar_lea.hbm %s1561_s6, 1024 }
 0x483   : > { %p1069_p2 = scmp.ne.s32.totalorder %s1450_s18, %s1068_s5  ;;  %p1073_p8 = scmp.lt.u32.totalorder %s1450_s18, %s1561_s6 }
 0x484   : > { %p1074_p9 = scmp.lt.u32.totalorder %s1072_s11, %s1068_s5  ;;  %p1076_p11 = scmp.lt.u32.totalorder %s1068_s5, %s1450_s18 }
 0x485   : > { %p1070_p5 = pnand %p1069_p2, %p1349_p12 }
 0x486   : > { %p1075_p10 = por %p1074_p9, %p1073_p8 }
 0x487   : > { %p1071_p6 = pneg %p1070_p5 }
 0x488   : > { %p1077_p0 = por %p1076_p11, %p1075_p10 }
 0x48a   : > { %p1078_p1 = pnand %p1077_p0, %p1071_p6 }
 0x48c   : > { %1081 = shalt.err (!%p1078_p1)
}
 0x48d   : > { %942 = dma.vmem_to_hbm [thread:$0]  (%p1349_p12), %s719_s9, 128, %s1450_s18, %s687_s13   ;;  %v586_v49 = vld [vmem:[%s1398_s17] sm:$0xff]  ;;  %v635_v50 = vld [vmem:[%s1398_s17 + $0x8] sm:$0xff] }
 0x48e   : > { %s889_s21 = sshll.u32 %s1192_s28, 8  ;;  %s700_s29 = sshll.u32 %s1398_s17, 4  ;;  %s1482_s29 = int_to_ptr.vmem [resolvable:$true] %s700_s29 }
 0x48f   : > { %s1601_s14 = sld [smem:[#allocation22_spill]]  ;;  %s1603_s28 = sand.u32 1, %s1180_s25  }
 0x490   : > { %s1490_s18 = scalar_lea.sflag [#allocation3], %s1603_s28  ;;  %s1082_s9 = scalar_lea.vmem %s1482_s29, 256 }
 0x491   : > { %p1083_p12 = scmp.ne.s32.totalorder %s1482_s29, %s1082_s9  ;;  %s1212_s13 = smov [#allocation2]  }
 0x492   : > { %s1086_s15 = sshll.u32 %s1212_s13, 4  ;;  %s1087_s15 = int_to_ptr.vmem [resolvable:$false] %s1086_s15 }
 0x493   : > { %p1084_p4 = pnand %p1083_p12, %p1320_p3  ;;  %s1088_s19 = scalar_lea.vmem %s1087_s15, 512 }
 0x494   : > { %p1089_p5 = scmp.lt.s32.totalorder %s1482_s29, %s1087_s15  ;;  %p1090_p6 = scmp.lt.s32.totalorder %s1088_s19, %s1082_s9 }
 0x495   : > { %s1480_s8 = scalar_lea.hbm %s1601_s14, %s889_s21  ;;  %p1085_p2 = pneg %p1084_p4 }
 0x496   : > { %p1091_p8 = por %p1090_p6, %p1089_p5 }
 0x498   : > { %p1092_p9 = pnand %p1091_p8, %p1085_p2 }
 0x553   : > { %v627_v51 = vpop.f32.mrb[8].mxu0  ;;  %v673_v52 = vpop.f32.mrb[8].mxu1 }
 0x554   : > { %v633_v53 = vadd.f32 %v627_v51, %v586_v49  ;;  %v679_v54 = vadd.f32 %v673_v52, %v635_v50  ;;  %v933_v55 = vpop.f32.mrb[9].mxu0  ;;  %v939_v56 = vpop.f32.mrb[9].mxu1 }
 0x555   : > { %v630_v57 = vpop.f32.mrb[10].mxu0  ;;  %v676_v58 = vpop.f32.mrb[10].mxu1 }
 0x556   : > { %634 = vst.msk [vmem:[%s1398_s17] sm:$0xff] %vm371_vm2, %v633_v53  ;;  %680 = vst.msk [vmem:[%s1398_s17 + $0x8] sm:$0xff] %vm371_vm2, %v679_v54  ;;  %v934_v59 = vpop.f32.mrb[11].mxu0  ;;  %v940_v60 = vpop.f32.mrb[11].mxu1 }
 0x557   : > { %1095 = shalt.err (!%p1092_p9)
}
 0x558   : > { %s1096_s17 = scalar_lea.hbm %s1480_s8, 256  ;;  %s1100_s5 = scalar_lea.hbm %s1601_s14, 512 }
 0x559   : > { %p1097_p10 = scmp.ne.s32.totalorder %s1480_s8, %s1096_s17  ;;  %p1101_p1 = scmp.lt.u32.totalorder %s1480_s8, %s1601_s14 }
 0x55a   : > { %p1102_p12 = scmp.lt.u32.totalorder %s1100_s5, %s1096_s17  ;;  %p1104_p2 = scmp.lt.u32.totalorder %s1096_s17, %s1480_s8 }
 0x55b   : > { %p1098_p11 = pnand %p1097_p10, %p1320_p3 }
 0x55c   : > { %p1103_p4 = por %p1102_p12, %p1101_p1 }
 0x55d   : > { %p1099_p0 = pneg %p1098_p11 }
 0x55e   : > { %p1105_p5 = por %p1104_p2, %p1103_p4 }
 0x560   : > { %p1106_p6 = pnand %p1105_p5, %p1099_p0 }
 0x562   : > { %1109 = shalt.err (!%p1106_p6)
}
 0x563   : > { %s1213_s11 = smov 128  }
 0x564   : > { %941 = dma.vmem_to_hbm [thread:$0]  (%p1320_p3), %s1482_s29, 256, %s1480_s8, %s1490_s18, %s1213_s11, %s1213_s11, %s1209_s24  }
 0x565 PF: > { %s1604_s23 = sld [smem:[#allocation14_spill]]  ;;  %s1605_s26 = sld [smem:[#allocation10_spill]] }
 0x56b   : > { %p952_p8 = scmp.ge.s32.totalorder %s1604_s23, 2  ;;  %s730_s7 = sand.u32 1, %s1605_s26  }
 0x56c   : > { %s731_s10 = scalar_lea.sflag [#allocation3], %s730_s7 }
 0x56d   : > { %p946_p9 = pnand %p952_p8, %p1337_p7 }
 0x56f   : > { %1155 = dma.done.wait (!%p946_p9), %s731_s10, 256  }
 0x570   : > { %1157 = vsyncadd (!%p946_p9), %s731_s10, 4294967040  ;;  %s1607_s28 = sld [smem:[#allocation8_spill]]  ;;  %p949_p10 = pnand %p952_p8, %p1361_p13 }
 0x576   : > { %s739_s13 = sand.u32 1, %s1607_s28  }
 0x577   : > { %s740_s12 = scalar_lea.sflag [#allocation5], %s739_s13 }
 0x578   : > { %1159 = dma.done.wait (!%p949_p10), %s740_s12, 128  }
 0x579   : > { %1161 = vsyncadd (!%p949_p10), %s740_s12, 4294967168  ;;  %s23_s7 = sadd.s32 1, %s1604_s23   ;;  %s1609_s24 = sld [smem:[#allocation9_spill]] }
 0x57a   : > { %p20_p3 = scmp.ge.s32.totalorder %s23_s7, 10   ;;  %s1610_s23 = sld [smem:[#allocation20_spill]] }
 0x57b   : > { %s1611_s29 = sld [smem:[#allocation11_spill]]  ;;  %s1612_s26 = sld [smem:[#allocation19_spill]] }
 0x57c   : > { %s1613_s27 = sld [smem:[#allocation12_spill]]  ;;  %s1614_s28 = sld [smem:[#allocation13_spill]] }
 0x57d   : > { %s1615_s8 = sld [smem:[#allocation15_spill]]  ;;  %s1616_s30 = sld [smem:[#allocation17_spill]] }
 0x57e   : > { %s1617_s21 = smov %s1168_s22  ;;  %22 = sbr.rel (!%p20_p3) target bundleno = 11 (0xb), region = 105 }
 0x57f   : > { %s1618_s22 = smov %s1609_s24  ;;  %s1619_s24 = smov %s1180_s25 }
 0x581   : > { %s1620_s25 = smov %s1611_s29 }
 0x583   : > { %s1621_s29 = smov %s1615_s8 }
 0x585   :  { %745 = vsyncpa [#allocation3], 1 }
 0x586   :  { %747 = vsyncpa [#allocation3 + $0x1], 1 }
 0x587   :  { %748 = vsyncpa [#allocation5], 1 }
 0x588   :  { %750 = vsyncpa [#allocation5 + $0x1], 1 }

</bundles_post_ra>
